<compile_context>
chip_gen: v6e
topology: v6e:2x2x1
jax: 0.10.0
libtpu: 0.0.40
codegen_flags: <defaults>
</compile_context>

<pallas_src>
import functools
import math

import jax
import jax.numpy as jnp
from jax import lax
from jax.experimental import pallas as pl
from jax.experimental.pallas import tpu as pltpu
from jax.scipy.special import logsumexp


# ----------------------------------------------------------------------------
# Kernel
# ----------------------------------------------------------------------------
def _ib_loss_kernel(dists_ref, target_ref, out_ref, *, k_sz, c_nll, c_cat,
                    static_k_loop):
    """One grid step: (bt, K, st, L) block -> accumulate (1, 1, L) lane sums.

    c_nll = beta_nll / dims ; c_cat = beta_cat_ce (Python float constants).
    Grid = (hw_tile [parallel], batch_block [arbitrary]); the output block is
    indexed by the tile axis only, so it acts as an accumulator across batch.
    The K reduction is streamed slice-wise so only O(bt*st*L) f32 temporaries
    are live (never a full f32 copy of the input block).
    """
    bb = pl.program_id(1)

    @pl.when(bb == 0)
    def _init():
        out_ref[...] = jnp.zeros_like(out_ref)

    bt, _, st, lane = dists_ref.shape
    zeros = jnp.zeros((bt, 1, st, lane), jnp.float32)

    def z_at(kk):
        # Upcast per-slice; HBM traffic stays at the input dtype.
        return -0.5 * dists_ref[:, pl.ds(kk, 1)].astype(jnp.float32)

    def t_at(kk):
        return target_ref[:, pl.ds(kk, 1)].astype(jnp.float32)

    if static_k_loop:
        # Small K: fully static slices (zero index math, best scheduling).
        m = z_at(0)
        for kk in range(1, k_sz):
            m = jnp.maximum(m, z_at(kk))
        se, zt, ts = zeros, zeros, zeros
        for kk in range(k_sz):
            z = z_at(kk)
            t = t_at(kk)
            se = se + jnp.exp(z - m)
            zt = zt + z * t
            ts = ts + t
    else:
        # Large K: dynamic slices with bounded live ranges.
        m = lax.fori_loop(1, k_sz, lambda kk, m: jnp.maximum(m, z_at(kk)),
                          z_at(0))

        def acc_body(kk, carry):
            se, zt, ts = carry
            z = z_at(kk)
            t = t_at(kk)
            return (se + jnp.exp(z - m), zt + z * t, ts + t)

        se, zt, ts = lax.fori_loop(0, k_sz, acc_body, (zeros, zeros, zeros))

    lse = m + jnp.log(se)                       # (bt, 1, st, L)
    # Fused cross-entropy: -sum((z - lse) * t) = lse * sum(t) - sum(z * t).
    cat_pix = lse * ts - zt                     # (bt, 1, st, L)
    # beta_nll * (-lse) / dims + beta_cat_ce * cat_ce (jac handled outside).
    combined = c_cat * cat_pix - c_nll * lse    # (bt, 1, st, L)

    part = jnp.sum(combined, axis=(0, 2))       # (1, L)
    out_ref[...] += part[None]                  # (1, 1, L)


# ----------------------------------------------------------------------------
# Tiling / budget heuristics
# ----------------------------------------------------------------------------
def _round_up(x, m):
    return ((x + m - 1) // m) * m


def _round_down(x, m):
    return (x // m) * m


def _largest_divisor_leq(n, cap):
    cap = max(int(cap), 1)
    best = 1
    for d in range(1, n + 1):
        if n % d == 0 and d <= cap:
            best = d
    return best


def _vmem_capacity_bytes():
    try:
        return int(pltpu.get_tpu_info().vmem_capacity_bytes)
    except Exception:
        return 64 << 20   # conservative per-core fallback (v7x)


def _pick_tiles(b, k, s_raw, lane, itemsize_sum, budget):
    """Pick (bt, s_tile, s_total, n_t, n_b).

    s_tile is a multiple of 8 (or the full extent); s_total is s_raw padded
    up to n_t * s_tile.  The pixel axis is split into >= 2 tiles whenever the
    spatial extent allows it so both v7x TensorCores get work.
    """
    row_bytes = k * lane * itemsize_sum          # both inputs, one lane-row

    if s_raw < 16:
        # Too small to split into two multiple-of-8 tiles: full-extent block.
        s_tile = s_raw
        s_total = s_raw
    else:
        rows_fit = max(budget // row_bytes, 8)
        s_half = _round_up((s_raw + 1) // 2, 8)  # tile giving exactly 2 tiles
        s_tile = max(min(_round_down(rows_fit, 8), s_half), 8)
        s_total = _round_up(s_raw, s_tile)
    n_t = s_total // s_tile

    per_sample_block = s_tile * row_bytes
    bt = _largest_divisor_leq(b, max(budget // max(per_sample_block, 1), 1))
    n_b = b // bt
    return bt, s_tile, s_total, n_t, n_b


# ----------------------------------------------------------------------------
# Wrapper
# ----------------------------------------------------------------------------
def information_bottleneck_loss(inputs, target, mask, *, beta,
                                block_budget_bytes=None,
                                cast_inputs_to_bf16=False):
    """Pallas TPU implementation of InformationBottleneckLoss.forward."""
    del mask  # not used in the reference forward pass

    beta_nll = 1.0 / (1.0 + beta)
    beta_cat_ce = 1.0 * beta / (1.0 + beta)

    zixels = inputs["zixels"]
    jac = inputs["jac"]
    mu = inputs["mu"]
    dists = inputs["dists"]

    w = zixels.shape[-1]
    h = zixels.shape[-2]
    dims = mu.shape[-1]

    b_sz, k_sz = dists.shape[0], dists.shape[1]
    hw = dists.shape[-2] * dists.shape[-1]
    lane = 128

    c_nll = float(beta_nll) / float(dims)
    c_cat = float(beta_cat_ce)

    # Streamed dtypes (opt-in bf16 down-cast; in-kernel math is always f32).
    d_dtype = (jnp.bfloat16 if (cast_inputs_to_bf16 and dists.dtype == jnp.float32)
               else dists.dtype)
    t_dtype = (jnp.bfloat16 if (cast_inputs_to_bf16 and target.dtype == jnp.float32)
               else target.dtype)
    itemsize_sum = jnp.dtype(d_dtype).itemsize + jnp.dtype(t_dtype).itemsize

    # Generation-aware block budget (input bytes per grid step), tied to VMEM:
    # 2x double-buffered inputs + ~10 f32 lane-slabs of temporaries must fit
    # in ~80% of this chip's VMEM.
    cap = _vmem_capacity_bytes()
    if block_budget_bytes is None:
        budget = min(max(cap // 12, 4 << 20), 12 << 20)
    else:
        budget = int(block_budget_bytes)
    denom = 2.0 + 40.0 / float(k_sz * itemsize_sum)
    budget = max(min(budget, int(0.8 * cap / denom)), 64 * 1024)

    s_raw = (hw + lane - 1) // lane
    bt, s_tile, s_total, n_t, n_b = _pick_tiles(
        b_sz, k_sz, s_raw, lane, itemsize_sum, budget)
    hw_pad = s_total * lane

    # Lane-dense layout [B, K, s_total, 128]; zero-pad extra pixels so the
    # last dim stays a full 128 lanes (pad contribution corrected exactly in
    # the epilogue: each pad pixel adds -c_nll*log(K), zero cat term).
    dists_s = dists.astype(d_dtype)
    target_s = target.astype(t_dtype)
    if hw_pad != hw:
        pad = hw_pad - hw
        dists_s = jnp.pad(dists_s.reshape(b_sz, k_sz, hw),
                          ((0, 0), (0, 0), (0, pad)))
        target_s = jnp.pad(target_s.reshape(b_sz, k_sz, hw),
                           ((0, 0), (0, 0), (0, pad)))
    dists4 = dists_s.reshape(b_sz, k_sz, s_total, lane)
    target4 = target_s.reshape(b_sz, k_sz, s_total, lane)

    # VMEM accounting: double-buffered input blocks + slice-streamed f32
    # temporaries + headroom, capped generation-aware (<= ~85% of capacity).
    block_in_bytes = bt * k_sz * s_tile * lane * itemsize_sum
    temp_bytes = 10 * bt * s_tile * lane * 4
    vmem_limit = 2 * block_in_bytes + temp_bytes + (4 << 20)
    vmem_limit = int(min(max(vmem_limit, 32 << 20), int(0.85 * cap)))

    in_bytes = (dists4.size * jnp.dtype(d_dtype).itemsize
                + target4.size * jnp.dtype(t_dtype).itemsize)
    cost = pl.CostEstimate(
        flops=10 * b_sz * k_sz * hw_pad,
        transcendentals=b_sz * k_sz * hw_pad,
        bytes_accessed=in_bytes + n_t * lane * 4,
    )

    kernel = functools.partial(
        _ib_loss_kernel, k_sz=k_sz, c_nll=c_nll, c_cat=c_cat,
        static_k_loop=(k_sz <= 64))

    partials = pl.pallas_call(
        kernel,
        out_shape=jax.ShapeDtypeStruct((n_t, 1, lane), jnp.float32),
        grid_spec=pltpu.PrefetchScalarGridSpec(
            num_scalar_prefetch=0,
            grid=(n_t, n_b),
            in_specs=[
                pl.BlockSpec((bt, k_sz, s_tile, lane), lambda t, b: (b, 0, t, 0)),
                pl.BlockSpec((bt, k_sz, s_tile, lane), lambda t, b: (b, 0, t, 0)),
            ],
            out_specs=pl.BlockSpec((1, 1, lane), lambda t, b: (t, 0, 0)),
        ),
        compiler_params=pltpu.CompilerParams(
            dimension_semantics=("parallel", "arbitrary"),
            vmem_limit_bytes=vmem_limit,
        ),
        cost_estimate=cost,
    )(dists4, target4)

    # Exact scalar epilogue in JAX: cross-tile reduce, pad-pixel correction,
    # and the separable per-sample jacobian term
    #   beta_nll * mean_b(-jac_n[b]) / dims = -beta_nll*mean(jac)/(dims^2*w*h).
    n_real = float(b_sz * hw)
    n_pad = float(b_sz * (hw_pad - hw))
    pixel_sum = jnp.sum(partials)
    if n_pad > 0.0:
        pixel_sum = pixel_sum + n_pad * c_nll * math.log(float(k_sz))
    jac_mean = jnp.mean(jac.reshape(-1).astype(jnp.float32))
    loss = (pixel_sum / n_real
            - (float(beta_nll) / float(dims * dims * w * h)) * jac_mean)
    return loss


# ----------------------------------------------------------------------------
# Pure-JAX reference mirroring the PyTorch forward (f32 math).
# ----------------------------------------------------------------------------
def _reference_loss(inputs, target, *, beta):
    zixels, jac, mu, dists = (inputs["zixels"], inputs["jac"],
                              inputs["mu"], inputs["dists"])
    w = zixels.shape[-1]
    h = zixels.shape[-2]
    dims = mu.shape[-1]
    beta_nll = 1.0 / (1.0 + beta)
    beta_cat_ce = 1.0 * beta / (1.0 + beta)

    dists = dists.astype(jnp.float32)
    target = target.astype(jnp.float32)
    jac = jac.astype(jnp.float32)

    jac_n = jac.reshape(-1, 1, 1) / (dims * w * h)
    nll = (-logsumexp(-0.5 * dists, axis=1) - jac_n) / dims
    cat_ce = -jnp.sum(jax.nn.log_softmax(-0.5 * dists, axis=1) * target, axis=1)
    return beta_nll * nll.mean() + beta_cat_ce * cat_ce.mean()


# ----------------------------------------------------------------------------
# Self-test
# ----------------------------------------------------------------------------
if __name__ == "__main__":
    root_key = jax.random.PRNGKey(0)

    def make_case(case_idx, B, K, H, W, DIMS, dtype):
        key = jax.random.fold_in(root_key, case_idx)
        k1, k2, k3, k4, k5 = jax.random.split(key, 5)
        zixels = jax.random.normal(k1, (B, DIMS, H, W), dtype=jnp.float32)
        mu = jax.random.normal(k2, (K, DIMS), dtype=jnp.float32)
        dists = jax.random.uniform(k3, (B, K, H, W), dtype=jnp.float32,
                                   minval=0.0, maxval=8.0).astype(dtype)
        target = jax.nn.softmax(
            4.0 * jax.random.normal(k4, (B, K, H, W), dtype=jnp.float32),
            axis=1).astype(dtype)
        jac = jax.random.normal(k5, (B,), dtype=jnp.float32) * 10.0
        mask = jnp.ones((B, H, W), dtype=jnp.float32)  # unused by the loss
        return {"zixels": zixels, "jac": jac, "mu": mu, "dists": dists}, target, mask

    beta = 1.0
    cases = [
        # tiny spatial extent: single pixel tile (grid (1, 1))
        dict(B=2, K=4, H=16, W=16, DIMS=32, dtype=jnp.float32, budget=None,
             bf16=False, tol=1e-5),
        # default generation-aware budget; whole problem fits, but the
        # parallel pixel axis is still split into >= 2 tiles
        dict(B=2, K=4, H=64, W=64, DIMS=32, dtype=jnp.float32, budget=None,
             bf16=False, tol=1e-5),
        # forced small budget -> pixel tiling + batch-block accumulation
        dict(B=2, K=4, H=64, W=64, DIMS=32, dtype=jnp.float32, budget=32 * 1024,
             bf16=False, tol=1e-4),
        # bf16 inputs streamed straight from HBM, upcast in-kernel
        dict(B=2, K=4, H=64, W=64, DIMS=32, dtype=jnp.bfloat16, budget=32 * 1024,
             bf16=False, tol=1e-4),
        # hw % 128 != 0 -> zero-padded pixels + exact epilogue correction;
        # odd K / B exercise the non-power-of-2 paths
        dict(B=3, K=5, H=10, W=10, DIMS=16, dtype=jnp.float32, budget=None,
             bf16=False, tol=1e-5),
        # opt-in wrapper bf16 down-cast of f32 inputs (numerics change)
        dict(B=2, K=4, H=32, W=32, DIMS=32, dtype=jnp.float32, budget=None,
             bf16=True, tol=2e-2),
    ]

    for idx, c in enumerate(cases):
        inputs, target, mask = make_case(idx, c["B"], c["K"], c["H"], c["W"],
                                         c["DIMS"], c["dtype"])
        got = jax.block_until_ready(
            information_bottleneck_loss(inputs, target, mask, beta=beta,
                                        block_budget_bytes=c["budget"],
                                        cast_inputs_to_bf16=c["bf16"]))
        want = jax.block_until_ready(_reference_loss(inputs, target, beta=beta))
        assert jnp.allclose(got, want, rtol=c["tol"], atol=c["tol"]), (
            idx, float(got), float(want))

    print("KERNEL_OK")
</pallas_src>

<mosaic_0001>
module attributes {stable_mosaic.version = 11 : i64} {
  func.func @_ib_loss_kernel(%arg0: i32, %arg1: i32, %arg2: memref<2x4x2x128xf32, #tpu.memory_space<vmem>>, %arg3: memref<2x4x2x128xf32, #tpu.memory_space<vmem>>, %arg4: memref<1x1x128xf32, #tpu.memory_space<vmem>>) attributes {dimension_semantics = [#tpu.dimension_semantics<parallel>, #tpu.dimension_semantics<arbitrary>], iteration_bounds = array<i64: 1, 1>, scalar_prefetch = 0 : i64, scratch_operands = 0 : i64, tpu.core_type = #tpu.core_type<tc>, window_params = [{transform_indices = @transform_0, window_bounds = array<i64: 2, 4, 2, 128>}, {transform_indices = @transform_1, window_bounds = array<i64: 2, 4, 2, 128>}, {transform_indices = @transform_2, window_bounds = array<i64: 1, 1, 128>}]} {
    %c0_i32 = arith.constant 0 : i32
    %0 = arith.cmpi eq, %arg1, %c0_i32 : i32
    %1 = arith.extui %0 : i1 to i32
    %c0_i32_0 = arith.constant 0 : i32
    %2 = arith.cmpi ne, %1, %c0_i32_0 : i32
    scf.if %2 {
      %cst_62 = arith.constant 0.000000e+00 : f32
      %73 = vector.broadcast %cst_62 : f32 to vector<1x1x128xf32>
      %c0_63 = arith.constant 0 : index
      %c0_64 = arith.constant 0 : index
      %c0_65 = arith.constant 0 : index
      %74 = vector.load %arg4[%c0_63, %c0_64, %c0_65] : memref<1x1x128xf32, #tpu.memory_space<vmem>>, vector<1x1x128xf32>
      tpu.vector_store %arg4[%c0_63, %c0_64, %c0_65], %73 {strides = array<i32>} : memref<1x1x128xf32, #tpu.memory_space<vmem>>, vector<1x1x128xf32>,
    } else {
    }
    %cst = arith.constant 0.000000e+00 : f32
    %3 = vector.broadcast %cst : f32 to vector<2x1x2x128xf32>
    %c0 = arith.constant 0 : index
    %c0_1 = arith.constant 0 : index
    %c0_2 = arith.constant 0 : index
    %c0_3 = arith.constant 0 : index
    %4 = vector.load %arg2[%c0, %c0_1, %c0_2, %c0_3] : memref<2x4x2x128xf32, #tpu.memory_space<vmem>>, vector<2x1x2x128xf32>
    %cst_4 = arith.constant -5.000000e-01 : f32
    %5 = vector.broadcast %cst_4 : f32 to vector<2x1x2x128xf32>
    %6 = arith.mulf %5, %4 : vector<2x1x2x128xf32>
    %c0_5 = arith.constant 0 : index
    %c1 = arith.constant 1 : index
    %c0_6 = arith.constant 0 : index
    %c0_7 = arith.constant 0 : index
    %7 = vector.load %arg2[%c0_5, %c1, %c0_6, %c0_7] : memref<2x4x2x128xf32, #tpu.memory_space<vmem>>, vector<2x1x2x128xf32>
    %cst_8 = arith.constant -5.000000e-01 : f32
    %8 = vector.broadcast %cst_8 : f32 to vector<2x1x2x128xf32>
    %9 = arith.mulf %8, %7 : vector<2x1x2x128xf32>
    %10 = arith.maximumf %6, %9 : vector<2x1x2x128xf32>
    %c0_9 = arith.constant 0 : index
    %c2 = arith.constant 2 : index
    %c0_10 = arith.constant 0 : index
    %c0_11 = arith.constant 0 : index
    %11 = vector.load %arg2[%c0_9, %c2, %c0_10, %c0_11] : memref<2x4x2x128xf32, #tpu.memory_space<vmem>>, vector<2x1x2x128xf32>
    %cst_12 = arith.constant -5.000000e-01 : f32
    %12 = vector.broadcast %cst_12 : f32 to vector<2x1x2x128xf32>
    %13 = arith.mulf %12, %11 : vector<2x1x2x128xf32>
    %14 = arith.maximumf %10, %13 : vector<2x1x2x128xf32>
    %c0_13 = arith.constant 0 : index
    %c3 = arith.constant 3 : index
    %c0_14 = arith.constant 0 : index
    %c0_15 = arith.constant 0 : index
    %15 = vector.load %arg2[%c0_13, %c3, %c0_14, %c0_15] : memref<2x4x2x128xf32, #tpu.memory_space<vmem>>, vector<2x1x2x128xf32>
    %cst_16 = arith.constant -5.000000e-01 : f32
    %16 = vector.broadcast %cst_16 : f32 to vector<2x1x2x128xf32>
    %17 = arith.mulf %16, %15 : vector<2x1x2x128xf32>
    %18 = arith.maximumf %14, %17 : vector<2x1x2x128xf32>
    %c0_17 = arith.constant 0 : index
    %c0_18 = arith.constant 0 : index
    %c0_19 = arith.constant 0 : index
    %c0_20 = arith.constant 0 : index
    %19 = vector.load %arg2[%c0_17, %c0_18, %c0_19, %c0_20] : memref<2x4x2x128xf32, #tpu.memory_space<vmem>>, vector<2x1x2x128xf32>
    %cst_21 = arith.constant -5.000000e-01 : f32
    %20 = vector.broadcast %cst_21 : f32 to vector<2x1x2x128xf32>
    %21 = arith.mulf %20, %19 : vector<2x1x2x128xf32>
    %c0_22 = arith.constant 0 : index
    %c0_23 = arith.constant 0 : index
    %c0_24 = arith.constant 0 : index
    %c0_25 = arith.constant 0 : index
    %22 = vector.load %arg3[%c0_22, %c0_23, %c0_24, %c0_25] : memref<2x4x2x128xf32, #tpu.memory_space<vmem>>, vector<2x1x2x128xf32>
    %23 = arith.subf %21, %18 : vector<2x1x2x128xf32>
    %24 = math.exp %23 : vector<2x1x2x128xf32>
    %25 = arith.addf %3, %24 : vector<2x1x2x128xf32>
    %26 = arith.mulf %21, %22 : vector<2x1x2x128xf32>
    %27 = arith.addf %3, %26 : vector<2x1x2x128xf32>
    %28 = arith.addf %3, %22 : vector<2x1x2x128xf32>
    %c0_26 = arith.constant 0 : index
    %c1_27 = arith.constant 1 : index
    %c0_28 = arith.constant 0 : index
    %c0_29 = arith.constant 0 : index
    %29 = vector.load %arg2[%c0_26, %c1_27, %c0_28, %c0_29] : memref<2x4x2x128xf32, #tpu.memory_space<vmem>>, vector<2x1x2x128xf32>
    %cst_30 = arith.constant -5.000000e-01 : f32
    %30 = vector.broadcast %cst_30 : f32 to vector<2x1x2x128xf32>
    %31 = arith.mulf %30, %29 : vector<2x1x2x128xf32>
    %c0_31 = arith.constant 0 : index
    %c1_32 = arith.constant 1 : index
    %c0_33 = arith.constant 0 : index
    %c0_34 = arith.constant 0 : index
    %32 = vector.load %arg3[%c0_31, %c1_32, %c0_33, %c0_34] : memref<2x4x2x128xf32, #tpu.memory_space<vmem>>, vector<2x1x2x128xf32>
    %33 = arith.subf %31, %18 : vector<2x1x2x128xf32>
    %34 = math.exp %33 : vector<2x1x2x128xf32>
    %35 = arith.addf %25, %34 : vector<2x1x2x128xf32>
    %36 = arith.mulf %31, %32 : vector<2x1x2x128xf32>
    %37 = arith.addf %27, %36 : vector<2x1x2x128xf32>
    %38 = arith.addf %28, %32 : vector<2x1x2x128xf32>
    %c0_35 = arith.constant 0 : index
    %c2_36 = arith.constant 2 : index
    %c0_37 = arith.constant 0 : index
    %c0_38 = arith.constant 0 : index
    %39 = vector.load %arg2[%c0_35, %c2_36, %c0_37, %c0_38] : memref<2x4x2x128xf32, #tpu.memory_space<vmem>>, vector<2x1x2x128xf32>
    %cst_39 = arith.constant -5.000000e-01 : f32
    %40 = vector.broadcast %cst_39 : f32 to vector<2x1x2x128xf32>
    %41 = arith.mulf %40, %39 : vector<2x1x2x128xf32>
    %c0_40 = arith.constant 0 : index
    %c2_41 = arith.constant 2 : index
    %c0_42 = arith.constant 0 : index
    %c0_43 = arith.constant 0 : index
    %42 = vector.load %arg3[%c0_40, %c2_41, %c0_42, %c0_43] : memref<2x4x2x128xf32, #tpu.memory_space<vmem>>, vector<2x1x2x128xf32>
    %43 = arith.subf %41, %18 : vector<2x1x2x128xf32>
    %44 = math.exp %43 : vector<2x1x2x128xf32>
    %45 = arith.addf %35, %44 : vector<2x1x2x128xf32>
    %46 = arith.mulf %41, %42 : vector<2x1x2x128xf32>
    %47 = arith.addf %37, %46 : vector<2x1x2x128xf32>
    %48 = arith.addf %38, %42 : vector<2x1x2x128xf32>
    %c0_44 = arith.constant 0 : index
    %c3_45 = arith.constant 3 : index
    %c0_46 = arith.constant 0 : index
    %c0_47 = arith.constant 0 : index
    %49 = vector.load %arg2[%c0_44, %c3_45, %c0_46, %c0_47] : memref<2x4x2x128xf32, #tpu.memory_space<vmem>>, vector<2x1x2x128xf32>
    %cst_48 = arith.constant -5.000000e-01 : f32
    %50 = vector.broadcast %cst_48 : f32 to vector<2x1x2x128xf32>
    %51 = arith.mulf %50, %49 : vector<2x1x2x128xf32>
    %c0_49 = arith.constant 0 : index
    %c3_50 = arith.constant 3 : index
    %c0_51 = arith.constant 0 : index
    %c0_52 = arith.constant 0 : index
    %52 = vector.load %arg3[%c0_49, %c3_50, %c0_51, %c0_52] : memref<2x4x2x128xf32, #tpu.memory_space<vmem>>, vector<2x1x2x128xf32>
    %53 = arith.subf %51, %18 : vector<2x1x2x128xf32>
    %54 = math.exp %53 : vector<2x1x2x128xf32>
    %55 = arith.addf %45, %54 : vector<2x1x2x128xf32>
    %56 = arith.mulf %51, %52 : vector<2x1x2x128xf32>
    %57 = arith.addf %47, %56 : vector<2x1x2x128xf32>
    %58 = arith.addf %48, %52 : vector<2x1x2x128xf32>
    %59 = math.log %55 : vector<2x1x2x128xf32>
    %60 = arith.addf %18, %59 : vector<2x1x2x128xf32>
    %61 = arith.mulf %60, %58 : vector<2x1x2x128xf32>
    %62 = arith.subf %61, %57 : vector<2x1x2x128xf32>
    %cst_53 = arith.constant 5.000000e-01 : f32
    %63 = vector.broadcast %cst_53 : f32 to vector<2x1x2x128xf32>
    %64 = arith.mulf %63, %62 : vector<2x1x2x128xf32>
    %cst_54 = arith.constant 1.562500e-02 : f32
    %65 = vector.broadcast %cst_54 : f32 to vector<2x1x2x128xf32>
    %66 = arith.mulf %65, %60 : vector<2x1x2x128xf32>
    %67 = arith.subf %64, %66 : vector<2x1x2x128xf32>
    %cst_55 = arith.constant dense<0.000000e+00> : vector<1x128xf32>
    %68 = vector.multi_reduction <add>, %67, %cst_55 [0, 2] : vector<2x1x2x128xf32> to vector<1x128xf32>
    %c0_56 = arith.constant 0 : index
    %c0_57 = arith.constant 0 : index
    %c0_58 = arith.constant 0 : index
    %69 = vector.load %arg4[%c0_56, %c0_57, %c0_58] : memref<1x1x128xf32, #tpu.memory_space<vmem>>, vector<1x1x128xf32>
    %70 = vector.shape_cast %68 : vector<1x128xf32> to vector<1x1x128xf32>
    %71 = arith.addf %69, %70 : vector<1x1x128xf32>
    %c0_59 = arith.constant 0 : index
    %c0_60 = arith.constant 0 : index
    %c0_61 = arith.constant 0 : index
    %72 = vector.load %arg4[%c0_59, %c0_60, %c0_61] : memref<1x1x128xf32, #tpu.memory_space<vmem>>, vector<1x1x128xf32>
    tpu.vector_store %arg4[%c0_59, %c0_60, %c0_61], %71 {strides = array<i32>} : memref<1x1x128xf32, #tpu.memory_space<vmem>>, vector<1x1x128xf32>,
    return
  }
  func.func @transform_0(%arg0: i32, %arg1: i32) -> (i32, i32, i32, i32) {
    %c0_i32 = arith.constant 0 : i32
    %c0_i32_0 = arith.constant 0 : i32
    %c0_i32_1 = arith.constant 0 : i32
    return %arg1, %c0_i32, %arg0, %c0_i32_0 : i32, i32, i32, i32
  }
  func.func @transform_1(%arg0: i32, %arg1: i32) -> (i32, i32, i32, i32) {
    %c0_i32 = arith.constant 0 : i32
    %c0_i32_0 = arith.constant 0 : i32
    %c0_i32_1 = arith.constant 0 : i32
    return %arg1, %c0_i32, %arg0, %c0_i32_0 : i32, i32, i32, i32
  }
  func.func @transform_2(%arg0: i32, %arg1: i32) -> (i32, i32, i32) {
    %c0_i32 = arith.constant 0 : i32
    %c0_i32_0 = arith.constant 0 : i32
    %c0_i32_1 = arith.constant 0 : i32
    return %arg0, %c0_i32, %c0_i32_0 : i32, i32, i32
  }
}

</mosaic_0001>

<bundles_post_ra>
// kernel: tpu_custom_call.1
= control target key start
LH: loop header
LB: loop body
LE: loop exit
PB: predicated region body
PF: predicated region fallthrough
CT: control target
= control target key end

     0   :  { %7 = vsyncpa [#allocation3], 0  ;;  %s348_s0 = inlined_call_operand.hbm [shape: f32[2,4,2,128], index: 0, kind: input, shape index: {}]   ;;  %s349_s1 = inlined_call_operand.hbm [shape: f32[2,4,2,128], index: 1, kind: input, shape index: {}]   ;;  %s350_s2 = inlined_call_operand.hbm [shape: f32[1,1,128], index: 2, kind: output, shape index: {}]  }
   0x1   :  { %8 = vsyncpa [#allocation6], 0 }
   0x2   :  { %9 = vsyncpa [#allocation4], 0  ;;  %s274_s9 = smov [#allocation2]  }
   0x3   :  { %s15_s10 = sshll.u32 %s274_s9, 4  ;;  %s16_s10 = int_to_ptr.vmem [resolvable:$true] %s15_s10 }
   0x4   :  { %s216_s11 = scalar_lea.vmem %s16_s10, 256  ;;  %p221_p1 = scmp.lt.s32.totalorder %s16_s10, %s16_s10 }
   0x5   :  { %p217_p0 = scmp.ne.s32.totalorder %s16_s10, %s216_s11  ;;  %p222_p2 = scmp.lt.s32.totalorder %s216_s11, %s216_s11 }
   0x7   :  { %p223_p3 = por %p222_p2, %p221_p1 }
   0x9   :  { %p224_p4 = pnand %p223_p3, %p217_p0 }
   0xb   :  { %227 = shalt.err (!%p224_p4)
}
   0xc   :  { %s275_s12 = smov 32   ;;  %s276_s13 = smov 2  }
   0xd   :  { %21 = dma.hbm_to_vmem [thread:$0]  %s348_s0, 256, %s16_s10, [#allocation3], %s275_s12, %s275_s12, %s276_s13  }
   0xe   :  { %s277_s16 = smov [#allocation5]  }
   0xf   :  { %s27_s17 = sshll.u32 %s277_s16, 4  ;;  %s28_s17 = int_to_ptr.vmem [resolvable:$true] %s27_s17 }
  0x10   :  { %s236_s18 = scalar_lea.vmem %s28_s17, 256  ;;  %p241_p6 = scmp.lt.s32.totalorder %s28_s17, %s28_s17 }
  0x11   :  { %p237_p5 = scmp.ne.s32.totalorder %s28_s17, %s236_s18  ;;  %p242_p7 = scmp.lt.s32.totalorder %s236_s18, %s236_s18 }
  0x13   :  { %p243_p8 = por %p242_p7, %p241_p6 }
  0x15   :  { %p244_p9 = pnand %p243_p8, %p237_p5 }
  0x17   :  { %247 = shalt.err (!%p244_p9)
}
  0x18   :  { %33 = dma.hbm_to_vmem [thread:$0]  %s349_s1, 256, %s28_s17, [#allocation6], %s275_s12, %s275_s12, %s276_s13  }
  0x19   :  { %268 = dma.done.wait [#allocation3], 256  }
  0x1a   :  { %269 = vsyncadd [#allocation3], 4294967040 }
  0x1b   :  { %270 = dma.done.wait [#allocation6], 256  }
  0x1c   :  { %271 = vsyncadd [#allocation6], 4294967040  ;;  %v278_v0 = vmov 0.0   ;;  %v45_v1 = vld [vmem:[#allocation2] sm:$0x3]  ;;  %vm153_vm0 = vcmask 1041408  }
  0x1d   :  { %44 = vst [vmem:[#allocation7] sm:$0x1] %v278_v0  ;;  %v46_v2 = vld [vmem:[#allocation2 + $0x8] sm:$0x3]  ;;  %v50_v3 = vld [vmem:[#allocation2 + $0x2] sm:$0x3] }
  0x1e   :  { %v301_v4 = vmul.f32 -0.5, %v45_v1  ;;  %v303_v5 = vmul.f32 -0.5, %v46_v2  ;;  %v51_v6 = vld [vmem:[#allocation2 + $0xa] sm:$0x3]  ;;  %v52_v7 = vmul.f32 -0.5, %v50_v3  ;;  %s279_s0 = smov [#allocation7]  }
  0x1f   :  { %v53_v8 = vmul.f32 -0.5, %v51_v6  ;;  %v57_v9 = vld [vmem:[#allocation2 + $0x4] sm:$0x3]  ;;  %v58_v10 = vld [vmem:[#allocation2 + $0xc] sm:$0x3]  ;;  %s172_s1 = sshll.u32 %s279_s0, 4  ;;  %s173_s1 = int_to_ptr.vmem [resolvable:$true] %s172_s1 }
  0x20   :  { %v54_v11 = vmax.f32 %v301_v4, %v52_v7  ;;  %v306_v12 = vmul.f32 -0.5, %v57_v9  ;;  %v308_v13 = vmul.f32 -0.5, %v58_v10  ;;  %v64_v14 = vld [vmem:[#allocation2 + $0x6] sm:$0x3]  ;;  %v65_v15 = vld [vmem:[#allocation2 + $0xe] sm:$0x3]  ;;  %p253_p11 = scmp.lt.s32.totalorder %s173_s1, %s173_s1 }
  0x21   :  { %v55_v16 = vmax.f32 %v303_v5, %v53_v8  ;;  %v311_v17 = vmul.f32 -0.5, %v64_v14  ;;  %v313_v18 = vmul.f32 -0.5, %v65_v15  ;;  %v70_v53 = vld [vmem:[#allocation5] sm:$0x3]  ;;  %v87_v54 = vld [vmem:[#allocation5 + $0x2] sm:$0x3] }
  0x22   :  { %v61_v19 = vmax.f32 %v54_v11, %v306_v12  ;;  %v71_v55 = vld [vmem:[#allocation5 + $0x8] sm:$0x3]  ;;  %v88_v56 = vld [vmem:[#allocation5 + $0xa] sm:$0x3]  ;;  %v80_v57 = vmul.f32 %v70_v53, %v301_v4  ;;  %v97_v58 = vmul.f32 %v87_v54, %v52_v7  ;;  %v104_v61 = vld [vmem:[#allocation5 + $0x4] sm:$0x3]  ;;  %v101_v62 = vadd.f32 %v87_v54, %v70_v53 }
  0x23   :  { %v62_v20 = vmax.f32 %v55_v16, %v308_v13  ;;  %v81_v59 = vmul.f32 %v71_v55, %v303_v5  ;;  %v98_v60 = vmul.f32 %v88_v56, %v53_v8  ;;  %v105_v63 = vld [vmem:[#allocation5 + $0xc] sm:$0x3]  ;;  %v102_v0 = vadd.f32 %v88_v56, %v71_v55  ;;  %v121_v9 = vld [vmem:[#allocation5 + $0x6] sm:$0x3]  ;;  %v122_v11 = vld [vmem:[#allocation5 + $0xe] sm:$0x3] }
  0x24   :  { %v318_v21 = vmax.f32 %v61_v19, %v311_v17  ;;  %v99_v1 = vadd.f32 %v97_v58, %v80_v57  ;;  %v114_v2 = vmul.f32 %v104_v61, %v306_v12  ;;  %v115_v6 = vmul.f32 %v105_v63, %v308_v13  ;;  %s248_s21 = scalar_lea.vmem %s173_s1, 16  ;;  %s252_s22 = scalar_lea.vmem %s173_s1, 32 }
  0x25   :  { %v321_v22 = vmax.f32 %v62_v20, %v313_v18  ;;  %v100_v3 = vadd.f32 %v98_v60, %v81_v59  ;;  %v118_v10 = vadd.f32 %v104_v61, %v101_v62  ;;  %v119_v14 = vadd.f32 %v105_v63, %v102_v0  ;;  %p249_p10 = scmp.ne.s32.totalorder %s173_s1, %s248_s21  ;;  %p254_p12 = scmp.lt.s32.totalorder %s252_s22, %s248_s21 }
  0x26   :  { %v72_v23 = vsub.f32 %v301_v4, %v318_v21  ;;  %v89_v24 = vsub.f32 %v52_v7, %v318_v21  ;;  %v106_v25 = vsub.f32 %v306_v12, %v318_v21  ;;  %v123_v33 = vsub.f32 %v311_v17, %v318_v21 }
  0x27   :  { %v73_v26 = vsub.f32 %v303_v5, %v321_v22  ;;  %v90_v27 = vsub.f32 %v53_v8, %v321_v22  ;;  %v107_v28 = vsub.f32 %v308_v13, %v321_v22  ;;  %v124_v35 = vsub.f32 %v313_v18, %v321_v22  ;;  %p255_p13 = por %p254_p12, %p253_p11 }
  0x28   :  { %v74_v29 = vmul.f32 1.442695, %v72_v23  ;;  %v91_v30 = vmul.f32 1.442695, %v89_v24  ;;  %v108_v34 = vmul.f32 1.442695, %v106_v25  ;;  %v116_v15 = vadd.f32 %v114_v2, %v99_v1 }
  0x29   :  { %v76_v31 = vmul.f32 1.442695, %v73_v26  ;;  %v93_v32 = vmul.f32 1.442695, %v90_v27  ;;  %v110_v36 = vmul.f32 1.442695, %v107_v28  ;;  %v131_v4 = vmul.f32 %v121_v9, %v311_v17  ;;  %p256_p0 = pnand %p255_p13, %p249_p10 }
  0x2a   :  { %188 = vpow2.f32 %v74_v29  ;;  %v125_v37 = vmul.f32 1.442695, %v123_v33  ;;  %v127_v38 = vmul.f32 1.442695, %v124_v35  ;;  %v117_v5 = vadd.f32 %v115_v6, %v100_v3 }
  0x2b   :  { %190 = vpow2.f32 %v76_v31  ;;  %v132_v8 = vmul.f32 %v122_v11, %v313_v18  ;;  %v135_v19 = vadd.f32 %v121_v9, %v118_v10  ;;  %v136_v23 = vadd.f32 %v122_v11, %v119_v14 }
  0x2c   :  { %192 = vpow2.f32 %v91_v30  ;;  %v133_v12 = vadd.f32 %v131_v4, %v116_v15 }
  0x2d   :  { %194 = vpow2.f32 %v93_v32  ;;  %v134_v13 = vadd.f32 %v132_v8, %v117_v5 }
  0x2e   :  { %196 = vpow2.f32 %v108_v34 }
  0x2f   :  { %198 = vpow2.f32 %v110_v36 }
  0x30   :  { %200 = vpow2.f32 %v125_v37 }
  0x31   :  { %202 = vpow2.f32 %v127_v38 }
  0x37   :  { %v189_v39 = vpop.eup %188 }
  0x38   :  { %v191_v40 = vpop.eup %190 }
  0x39   :  { %v193_v41 = vpop.eup %192 }
  0x3a   :  { %v195_v42 = vpop.eup %194  ;;  %v95_v43 = vadd.f32 %v193_v41, %v189_v39 }
  0x3b   :  { %v197_v44 = vpop.eup %196  ;;  %v96_v45 = vadd.f32 %v195_v42, %v191_v40 }
  0x3c   :  { %v199_v46 = vpop.eup %198  ;;  %v112_v47 = vadd.f32 %v197_v44, %v95_v43 }
  0x3d   :  { %v201_v48 = vpop.eup %200  ;;  %v113_v49 = vadd.f32 %v199_v46, %v96_v45 }
  0x3e   :  { %v203_v50 = vpop.eup %202  ;;  %v129_v51 = vadd.f32 %v201_v48, %v112_v47 }
  0x3f   :  { %v130_v52 = vadd.f32 %v203_v50, %v113_v49 }
  0x40   :  { %204 = vlog2.f32 %v129_v51 }
  0x41   :  { %206 = vlog2.f32 %v130_v52 }
  0x4d   :  { %v205_v7 = vpop.eup %204 }
  0x4e   :  { %v207_v16 = vpop.eup %206  ;;  %v138_v20 = vmul.f32 0.6931472, %v205_v7 }
  0x4f   :  { %v140_v24 = vmul.f32 0.6931472, %v207_v16 }
  0x50   :  { %v141_v25 = vadd.f32 %v138_v20, %v318_v21 }
  0x51   :  { %v142_v26 = vadd.f32 %v140_v24, %v321_v22  ;;  %v163_v22 = vld [vmem:[#allocation7] sm:$0x1] }
  0x52   :  { %v143_v27 = vmul.f32 %v141_v25, %v135_v19  ;;  %v149_v30 = vmul.f32 0.015625, %v141_v25 }
  0x53   :  { %v144_v28 = vmul.f32 %v142_v26, %v136_v23  ;;  %v150_v31 = vmul.f32 0.015625, %v142_v26 }
  0x54   :  { %v145_v29 = vsub.f32 %v143_v27, %v133_v12 }
  0x55   :  { %v146_v17 = vsub.f32 %v144_v28, %v134_v13 }
  0x56   :  { %v147_v32 = vmul.f32 0.5, %v145_v29 }
  0x57   :  { %v148_v33 = vmul.f32 0.5, %v146_v17 }
  0x58   :  { %v151_v18 = vsub.f32 %v147_v32, %v149_v30 }
  0x59   :  { %v152_v34 = vsub.f32 %v148_v33, %v150_v31 }
  0x5a   :  { %v154_v35 = vsel %vm153_vm0, %v151_v18, 0.0 }
  0x5b   :  { %v155_v36 = vsel %vm153_vm0, %v152_v34, 0.0 }
  0x5c   :  { %v156_v37 = vadd.f32 %v155_v36, %v154_v35 }
  0x5e   :  { %v157_v38 = vrot.slane %v156_v37, 4 }
  0x60   :  { %v158_v39 = vadd.f32 %v157_v38, %v156_v37 }
  0x62   :  { %v159_v21 = vrot.slane %v158_v39, 2 }
  0x64   :  { %v160_v40 = vadd.f32 %v159_v21, %v158_v39 }
  0x66   :  { %v161_v41 = vrot.slane %v160_v40, 1 }
  0x68   :  { %v162_v42 = vadd.f32 %v161_v41, %v160_v40 }
  0x6a   :  { %v164_v43 = vadd.f32 %v163_v22, %v162_v42 }
  0x6c   :  { %165 = vst [vmem:[#allocation7] sm:$0x1] %v164_v43 }
  0x6d   :  { %259 = shalt.err (!%p256_p0)
}
  0x6e   :  { %175 = dma.vmem_to_hbm [thread:$0]  %s173_s1, 16, %s350_s2, [#allocation4]  }
  0x6f   :  { %272 = dma.done.wait [#allocation4], 16  }
  0x70   :  { %273 = vsyncadd [#allocation4], 4294967280 }
  0x71   :  { %179 = vsyncpa [#allocation3], 1 }
  0x72   :  { %180 = vsyncpa [#allocation6], 1 }
  0x73   :  { %181 = vsyncpa [#allocation4], 1 }

</bundles_post_ra>
